<compile_context>
chip_gen: v5e
topology: v5e:2x2
jax: 0.10.0
libtpu: 0.0.40
codegen_flags: <defaults>
</compile_context>

<pallas_src>
import functools

import jax
import jax.numpy as jnp
from jax.experimental import pallas as pl
from jax.experimental.pallas import tpu as pltpu


def _round_up(x, m):
    return ((x + m - 1) // m) * m


def _pick_tile(dim, max_tile, align):
    """(8,128)-aligned tile <= max_tile with bounded zero-padding waste."""
    dim_a = _round_up(dim, align)
    if dim_a <= max_tile:
        return dim_a                       # single block, no extra padding
    waste = _round_up(dim_a, max_tile) - dim_a
    if waste * 8 <= dim_a:                 # <=12.5% padding: big tile wins
        return max_tile
    # Too much padding: prefer an exact-divisor tile (largest, not absurdly small).
    for t in range(max_tile, align - 1, -align):
        if dim_a % t == 0 and t * 4 >= max_tile:
            return t
    return max_tile


@functools.lru_cache(maxsize=None)
def _hw_config():
    """Per-generation tile / VMEM-budget defaults."""
    mib = 1024 * 1024
    vmem_cap = 64 * mib                    # conservative default (v7x per-core)
    try:
        vmem_cap = int(pltpu.get_tpu_info().vmem_capacity_bytes)
    except Exception:
        pass
    if vmem_cap >= 96 * mib:               # v5e / v6e: 128 MiB VMEM
        return dict(tm=512, tn=512, tk=1024,
                    linear_vmem=64 * mib,
                    fuse_budget=48 * mib,
                    fuse_vmem=80 * mib)
    # v7x: 64 MiB VMEM but 3.2 TB/s HBM -> moderate tiles, tighter limits.
    return dict(tm=512, tn=512, tk=1024,
                linear_vmem=40 * mib,
                fuse_budget=24 * mib,
                fuse_vmem=40 * mib)


# ------------------------- tiled single-layer linear -------------------------

def _linear_kernel(x_ref, w_ref, b_ref, o_ref):
    k = pl.program_id(2)

    @pl.when(k == 0)
    def _():
        # Fold the bias into the accumulator init; output block stays resident
        # in VMEM across the (last, "arbitrary") k axis.
        o_ref[...] = jnp.broadcast_to(b_ref[...], o_ref.shape).astype(o_ref.dtype)

    # bf16 MXU inputs, f32 accumulation directly into the resident f32 block.
    o_ref[...] += jnp.dot(x_ref[...].astype(jnp.bfloat16),
                          w_ref[...].astype(jnp.bfloat16),
                          preferred_element_type=jnp.float32)


def pallas_linear(x, w_t, b, *, tm=None, tn=None, tk=None, vmem_limit_bytes=None):
    """y = x @ w_t + b with a tiled (i, j, k) grid and f32 accumulation.

    x   : (N, K) float32
    w_t : (K, M) float32 or bfloat16 (PyTorch weight pre-transposed)
    b   : (M,) or (1, M) float32
    Returns (N, M) float32; any internal tile padding is sliced off here.
    """
    cfg = _hw_config()
    tm = cfg["tm"] if tm is None else tm
    tn = cfg["tn"] if tn is None else tn
    tk = cfg["tk"] if tk is None else tk
    vmem_limit_bytes = cfg["linear_vmem"] if vmem_limit_bytes is None else vmem_limit_bytes

    N, K = x.shape
    K2, M = w_t.shape
    assert K == K2
    b = b.reshape(1, -1)
    assert b.shape[1] == M

    tm_e = _pick_tile(N, tm, 8)
    tk_e = _pick_tile(K, tk, 128)
    tn_e = _pick_tile(M, tn, 128)

    Np, Kp, Mp = _round_up(N, tm_e), _round_up(K, tk_e), _round_up(M, tn_e)

    # Keep >=2 output blocks when the shape allows so both v7x TCs get work.
    if Np // tm_e == 1 and Mp // tn_e == 1:
        if Mp >= 256 and Mp % 256 == 0:
            tn_e = Mp // 2
        elif Np >= 16 and Np % 16 == 0:
            tm_e = Np // 2

    xp = x if (Np, Kp) == (N, K) else jnp.pad(x, ((0, Np - N), (0, Kp - K)))
    wp = w_t if (Kp, Mp) == (K, M) else jnp.pad(w_t, ((0, Kp - K), (0, Mp - M)))
    bp = b if Mp == M else jnp.pad(b, ((0, 0), (0, Mp - M)))

    grid = (Np // tm_e, Mp // tn_e, Kp // tk_e)

    cost = pl.CostEstimate(
        flops=2 * Np * Kp * Mp,
        transcendentals=0,
        bytes_accessed=int(xp.size * xp.dtype.itemsize
                           + wp.size * wp.dtype.itemsize
                           + bp.size * bp.dtype.itemsize
                           + Np * Mp * 4),
    )

    out = pl.pallas_call(
        _linear_kernel,
        out_shape=jax.ShapeDtypeStruct((Np, Mp), jnp.float32),
        grid_spec=pltpu.PrefetchScalarGridSpec(
            num_scalar_prefetch=0,
            grid=grid,
            in_specs=[
                pl.BlockSpec((tm_e, tk_e), lambda i, j, k: (i, k)),
                pl.BlockSpec((tk_e, tn_e), lambda i, j, k: (k, j)),
                pl.BlockSpec((1, tn_e), lambda i, j, k: (0, j)),
            ],
            out_specs=pl.BlockSpec((tm_e, tn_e), lambda i, j, k: (i, j)),
        ),
        compiler_params=pltpu.CompilerParams(
            dimension_semantics=("parallel", "parallel", "arbitrary"),
            vmem_limit_bytes=vmem_limit_bytes,
        ),
        cost_estimate=cost,
    )(xp, wp, bp)

    return out[:N, :M] if (Np, Mp) != (N, M) else out


# ----------------------- fused multi-layer linear stack ----------------------

def _make_fused_kernel(num_layers):
    def kernel(x_ref, *refs):
        o_ref = refs[-1]
        h = x_ref[...]
        for li in range(num_layers):
            w = refs[2 * li][...]
            bias = refs[2 * li + 1][...]
            h = jnp.dot(h.astype(jnp.bfloat16), w.astype(jnp.bfloat16),
                        preferred_element_type=jnp.float32) + bias
        o_ref[...] = h.astype(o_ref.dtype)
    return kernel


def pallas_dense_fused(x, padded_params, dims_p, *, tm=256, vmem_limit_bytes=None):
    """All Linear layers in one pallas_call; weights stay VMEM-resident and the
    activation never round-trips through HBM between layers.

    x            : (N, dims_p[0]) f32, feature dim already padded to 128.
    padded_params: [(w_bf16 (Kp_i, Mp_i), b_f32 (1, Mp_i)), ...] pre-padded.
    Returns (N, dims_p[-1]) f32 (caller slices the logical output features).
    """
    cfg = _hw_config()
    vmem_limit_bytes = cfg["fuse_vmem"] if vmem_limit_bytes is None else vmem_limit_bytes

    N, K0 = x.shape
    assert K0 == dims_p[0]
    tm_e = min(tm, _round_up(N, 8))
    Np = _round_up(N, tm_e)
    xp = x if Np == N else jnp.pad(x, ((0, Np - N), (0, 0)))

    Mp = dims_p[-1]
    in_specs = [pl.BlockSpec((tm_e, dims_p[0]), lambda i: (i, 0))]
    flat = []
    for w, bb in padded_params:
        flat.extend([w, bb])
        dkp, dmp = w.shape
        # Constant block index -> DMA'd once, then kept resident across i.
        in_specs.append(pl.BlockSpec((dkp, dmp), lambda i: (0, 0)))
        in_specs.append(pl.BlockSpec((1, dmp), lambda i: (0, 0)))

    cost = pl.CostEstimate(
        flops=2 * Np * sum(a * b for a, b in zip(dims_p[:-1], dims_p[1:])),
        transcendentals=0,
        bytes_accessed=int(xp.size * 4
                           + sum(p.size * p.dtype.itemsize for p in flat)
                           + Np * Mp * 4),
    )

    out = pl.pallas_call(
        _make_fused_kernel(len(padded_params)),
        out_shape=jax.ShapeDtypeStruct((Np, Mp), jnp.float32),
        grid_spec=pltpu.PrefetchScalarGridSpec(
            num_scalar_prefetch=0,
            grid=(Np // tm_e,),
            in_specs=in_specs,
            out_specs=pl.BlockSpec((tm_e, Mp), lambda i: (i, 0)),
        ),
        compiler_params=pltpu.CompilerParams(
            dimension_semantics=("parallel",),
            vmem_limit_bytes=vmem_limit_bytes,
        ),
        cost_estimate=cost,
    )(xp, *flat)

    return out[:N] if Np != N else out


# ------------------------------- module wrapper -------------------------------

class DensePallas:
    """Equivalent of the PyTorch Dense module: Flatten + chained nn.Linear."""

    def __init__(self, dims, key):
        self.dims = list(dims)
        self.params = []   # f32 originals (w_t (K, M), b (M,)) -- reference copy
        for in_dim, out_dim in zip(self.dims, self.dims[1:]):
            key, kw, kb = jax.random.split(key, 3)
            bound = 1.0 / float(in_dim) ** 0.5
            w = jax.random.uniform(kw, (out_dim, in_dim), jnp.float32,
                                   minval=-bound, maxval=bound)
            b = jax.random.uniform(kb, (out_dim,), jnp.float32,
                                   minval=-bound, maxval=bound)
            self.params.append((jnp.transpose(w), b))

        # Pre-pad (lane-dense, 128 multiples) and pre-cast weights to bf16 ONCE.
        self.dims_p = [_round_up(d, 128) for d in self.dims]
        self.padded_params = []
        for (w_t, b), dk, dm, dkp, dmp in zip(self.params, self.dims[:-1],
                                              self.dims[1:], self.dims_p[:-1],
                                              self.dims_p[1:]):
            wp = jnp.pad(w_t, ((0, dkp - dk), (0, dmp - dm))).astype(jnp.bfloat16)
            bp = jnp.pad(b, (0, dmp - dm)).reshape(1, dmp)
            self.padded_params.append((wp, bp))

    def _fused_vmem_bytes(self, tm_e):
        # Accounts for default double-buffering of every operand plus the live
        # f32 intermediate activations of the whole layer chain.
        w_bytes = sum(w.size * 2 + bb.size * 4 for w, bb in self.padded_params)
        io_bytes = tm_e * (self.dims_p[0] + self.dims_p[-1]) * 4
        act_bytes = tm_e * sum(self.dims_p) * 4 + tm_e * max(self.dims_p) * 2
        return 2 * (w_bytes + io_bytes) + act_bytes

    def __call__(self, x):
        cfg = _hw_config()
        n = x.shape[0]
        h = x.reshape(n, -1)               # Flatten, row-major == torch .view(N,-1)
        k0, k0p = self.dims[0], self.dims_p[0]
        assert h.shape[1] == k0
        hp = jnp.pad(h, ((0, 0), (0, k0p - k0))) if k0p != k0 else h

        tm_e = min(256, _round_up(n, 8))
        if self._fused_vmem_bytes(tm_e) <= cfg["fuse_budget"]:
            out = pallas_dense_fused(hp, self.padded_params, self.dims_p)
        else:
            # Large stacks: one tiled, pipelined matmul per layer. Activations
            # stay feature-padded between layers; slice once at the end.
            out = hp
            for wp, bp in self.padded_params:
                out = pallas_linear(out, wp, bp)

        m = self.dims[-1]
        return out[:, :m] if out.shape[1] != m else out


if __name__ == "__main__":
    key = jax.random.PRNGKey(0)
    key, kx = jax.random.split(key)

    # Small NCHW input; flattened feature dim = 4*4*4 = 64
    x = jax.random.normal(kx, (2, 4, 4, 4), jnp.float32)

    dims = [64, 32, 16]  # two Linear layers: 64->32, 32->16
    model = DensePallas(dims, key)

    y = jax.block_until_ready(model(x))
    assert y.shape == (2, 16)

    # Reference in plain JAX with matched (bf16-input, f32-accumulate) precision.
    def bf16_matmul_ref(h, w, b):
        return jnp.dot(h.astype(jnp.bfloat16).astype(jnp.float32),
                       w.astype(jnp.bfloat16).astype(jnp.float32)) + b

    h_ref = x.reshape(x.shape[0], -1)
    for w_t, b in model.params:
        h_ref = bf16_matmul_ref(h_ref, w_t, b)
    assert jnp.allclose(y, h_ref, atol=1e-2, rtol=1e-2), \
        float(jnp.max(jnp.abs(y - h_ref)))

    # Also exercise the tiled (i, j, k) path: multiple k-steps + ragged padding.
    key, ka, kw2, kb2 = jax.random.split(key, 4)
    a = jax.random.normal(ka, (10, 1024), jnp.float32)
    w2 = jax.random.normal(kw2, (1024, 200), jnp.float32) * 0.02
    b2 = jax.random.normal(kb2, (200,), jnp.float32) * 0.02
    y2 = jax.block_until_ready(pallas_linear(a, w2, b2, tk=256))
    y2_ref = bf16_matmul_ref(a, w2, b2)
    assert y2.shape == (10, 200)
    assert jnp.allclose(y2, y2_ref, atol=1e-2, rtol=1e-2)

    print("KERNEL_OK")
</pallas_src>

<mosaic_0001>
module attributes {stable_mosaic.version = 11 : i64} {
  func.func @kernel(%arg0: i32, %arg1: memref<8x128xf32, #tpu.memory_space<vmem>>, %arg2: memref<128x128xbf16, #tpu.memory_space<vmem>>, %arg3: memref<1x128xf32, #tpu.memory_space<vmem>>, %arg4: memref<128x128xbf16, #tpu.memory_space<vmem>>, %arg5: memref<1x128xf32, #tpu.memory_space<vmem>>, %arg6: memref<8x128xf32, #tpu.memory_space<vmem>>) attributes {dimension_semantics = [#tpu.dimension_semantics<parallel>], iteration_bounds = array<i64: 1>, scalar_prefetch = 0 : i64, scratch_operands = 0 : i64, tpu.core_type = #tpu.core_type<tc>, window_params = [{transform_indices = @transform_0, window_bounds = array<i64: 8, 128>}, {pipeline_mode = #tpu.pipeline_mode<synchronous>, transform_indices = @transform_1, window_bounds = array<i64: 128, 128>}, {pipeline_mode = #tpu.pipeline_mode<synchronous>, transform_indices = @transform_2, window_bounds = array<i64: 1, 128>}, {pipeline_mode = #tpu.pipeline_mode<synchronous>, transform_indices = @transform_3, window_bounds = array<i64: 128, 128>}, {pipeline_mode = #tpu.pipeline_mode<synchronous>, transform_indices = @transform_4, window_bounds = array<i64: 1, 128>}, {transform_indices = @transform_5, window_bounds = array<i64: 8, 128>}]} {
    %c0 = arith.constant 0 : index
    %c0_0 = arith.constant 0 : index
    %0 = vector.load %arg1[%c0, %c0_0] : memref<8x128xf32, #tpu.memory_space<vmem>>, vector<8x128xf32>
    %c0_1 = arith.constant 0 : index
    %c0_2 = arith.constant 0 : index
    %1 = vector.load %arg2[%c0_1, %c0_2] : memref<128x128xbf16, #tpu.memory_space<vmem>>, vector<128x128xbf16>
    %c0_3 = arith.constant 0 : index
    %c0_4 = arith.constant 0 : index
    %2 = vector.load %arg3[%c0_3, %c0_4] : memref<1x128xf32, #tpu.memory_space<vmem>>, vector<1x128xf32>
    %3 = arith.truncf %0 : vector<8x128xf32> to vector<8x128xbf16>
    %cst = arith.constant dense<0.000000e+00> : vector<8x128xf32>
    %4 = tpu.matmul %3, %1, %cst {dimension_numbers = #tpu.dot_dimension_numbers<[1], [0], [0], [1], [0, 0, 1, 1], [], []>} : vector<8x128xbf16>, vector<128x128xbf16>, vector<8x128xf32> -> vector<8x128xf32>
    %5 = vector.broadcast %2 : vector<1x128xf32> to vector<8x128xf32>
    %6 = arith.addf %4, %5 : vector<8x128xf32>
    %c0_5 = arith.constant 0 : index
    %c0_6 = arith.constant 0 : index
    %7 = vector.load %arg4[%c0_5, %c0_6] : memref<128x128xbf16, #tpu.memory_space<vmem>>, vector<128x128xbf16>
    %c0_7 = arith.constant 0 : index
    %c0_8 = arith.constant 0 : index
    %8 = vector.load %arg5[%c0_7, %c0_8] : memref<1x128xf32, #tpu.memory_space<vmem>>, vector<1x128xf32>
    %9 = arith.truncf %6 : vector<8x128xf32> to vector<8x128xbf16>
    %cst_9 = arith.constant dense<0.000000e+00> : vector<8x128xf32>
    %10 = tpu.matmul %9, %7, %cst_9 {dimension_numbers = #tpu.dot_dimension_numbers<[1], [0], [0], [1], [0, 0, 1, 1], [], []>} : vector<8x128xbf16>, vector<128x128xbf16>, vector<8x128xf32> -> vector<8x128xf32>
    %11 = vector.broadcast %8 : vector<1x128xf32> to vector<8x128xf32>
    %12 = arith.addf %10, %11 : vector<8x128xf32>
    %c0_10 = arith.constant 0 : index
    %c0_11 = arith.constant 0 : index
    %13 = vector.load %arg6[%c0_10, %c0_11] : memref<8x128xf32, #tpu.memory_space<vmem>>, vector<8x128xf32>
    tpu.vector_store %arg6[%c0_10, %c0_11], %12 {strides = array<i32>} : memref<8x128xf32, #tpu.memory_space<vmem>>, vector<8x128xf32>,
    return
  }
  func.func @transform_0(%arg0: i32) -> (i32, i32) {
    %c0_i32 = arith.constant 0 : i32
    %c0_i32_0 = arith.constant 0 : i32
    return %arg0, %c0_i32 : i32, i32
  }
  func.func @transform_1(%arg0: i32) -> (i32, i32) {
    %c0_i32 = arith.constant 0 : i32
    %c0_i32_0 = arith.constant 0 : i32
    %c0_i32_1 = arith.constant 0 : i32
    return %c0_i32, %c0_i32_0 : i32, i32
  }
  func.func @transform_2(%arg0: i32) -> (i32, i32) {
    %c0_i32 = arith.constant 0 : i32
    %c0_i32_0 = arith.constant 0 : i32
    %c0_i32_1 = arith.constant 0 : i32
    return %c0_i32, %c0_i32_0 : i32, i32
  }
  func.func @transform_3(%arg0: i32) -> (i32, i32) {
    %c0_i32 = arith.constant 0 : i32
    %c0_i32_0 = arith.constant 0 : i32
    %c0_i32_1 = arith.constant 0 : i32
    return %c0_i32, %c0_i32_0 : i32, i32
  }
  func.func @transform_4(%arg0: i32) -> (i32, i32) {
    %c0_i32 = arith.constant 0 : i32
    %c0_i32_0 = arith.constant 0 : i32
    %c0_i32_1 = arith.constant 0 : i32
    return %c0_i32, %c0_i32_0 : i32, i32
  }
  func.func @transform_5(%arg0: i32) -> (i32, i32) {
    %c0_i32 = arith.constant 0 : i32
    %c0_i32_0 = arith.constant 0 : i32
    return %arg0, %c0_i32 : i32, i32
  }
}

</mosaic_0001>

<bundles_post_ra>
// kernel: tpu_custom_call.1
= control target key start
LH: loop header
LB: loop body
LE: loop exit
PB: predicated region body
PF: predicated region fallthrough
CT: control target
= control target key end

     0   :  { %10 = vsyncpa [#allocation3], 0  ;;  %s494_s0 = inlined_call_operand.hbm [shape: f32[8,128], index: 0, kind: input, shape index: {}]   ;;  %s495_s1 = inlined_call_operand.hbm [shape: bf16[128,128], index: 1, kind: input, shape index: {}]   ;;  %s496_s2 = inlined_call_operand.vmem [shape: f32[1,128], index: 2, kind: input, shape index: {}]   ;;  %s497_s3 = inlined_call_operand.hbm [shape: bf16[128,128], index: 3, kind: input, shape index: {}]   ;;  %s498_s4 = inlined_call_operand.vmem [shape: f32[1,128], index: 4, kind: input, shape index: {}]   ;;  %s499_s5 = inlined_call_operand.hbm [shape: f32[8,128], index: 5, kind: output, shape index: {}]  }
   0x1   :  { %11 = vsyncpa [#allocation6], 0  ;;  %s28_s20 = sshll.u32 %s495_s1, 4  ;;  %s29_s20 = int_to_ptr.hbm [resolvable:$true] %s28_s20 }
   0x2   :  { %12 = vsyncpa [#allocation4], 0  ;;  %s440_s21 = smov [#allocation5]   ;;  %s18_s25 = sshll.u32 %s494_s0, 4  ;;  %s19_s25 = int_to_ptr.hbm [resolvable:$true] %s18_s25 }
   0x3   :  { %s30_s22 = sshll.u32 %s440_s21, 4  ;;  %s441_s26 = smov 64   ;;  %s31_s22 = int_to_ptr.vmem [resolvable:$true] %s30_s22 }
   0x4   :  { %s442_s27 = smov 4   ;;  %s443_s28 = smov [#allocation2]  }
   0x5   :  { %36 = dma.hbm_to_vmem [thread:$0]  %s29_s20, 1024, %s31_s22, [#allocation6], %s441_s26, %s441_s26, %s442_s27  }
   0x6   :  { %s20_s29 = sshll.u32 %s443_s28, 4  ;;  %s43_s7 = sshll.u32 %s497_s3, 4  ;;  %s21_s29 = int_to_ptr.vmem [resolvable:$true] %s20_s29  ;;  %s44_s7 = int_to_ptr.hbm [resolvable:$true] %s43_s7 }
   0x7   :  { %23 = dma.hbm_to_vmem [thread:$0]  %s19_s25, 128, %s21_s29, [#allocation3]  }
   0x8   :  { %s444_s1 = smov [#allocation7]  }
   0x9   :  { %s45_s8 = sshll.u32 %s444_s1, 4  ;;  %s46_s8 = int_to_ptr.vmem [resolvable:$true] %s45_s8 }
   0xa   :  { %51 = dma.hbm_to_vmem [thread:$0]  %s44_s7, 1024, %s46_s8, [#allocation6], %s441_s26, %s441_s26, %s442_s27  }
   0xb   :  { %434 = dma.done.wait [#allocation3], 128  }
   0xc   :  { %435 = vsyncadd [#allocation3], 4294967168 }
   0xd   :  { %436 = dma.done.wait [#allocation6], 2048  }
   0xe   :  { %437 = vsyncadd [#allocation6], 4294965248  ;;  %v321_v0 = vld [vmem:[#allocation5 + $0x38] sm:$0xff]  ;;  %v320_v1 = vld [vmem:[#allocation5 + $0x30] sm:$0xff]  ;;  %s445_s11 = smov [#allocation8]   ;;  %s239_s15 = sshll.u32 %s499_s5, 4  ;;  %s240_s15 = int_to_ptr.hbm [resolvable:$true] %s239_s15 }
   0xf   :  { %136 = vmatpush.bf16.msra.mxu0 %v321_v0  ;;  %v329_v2 = vld [vmem:[#allocation7 + $0x38] sm:$0xff]  ;;  %v328_v3 = vld [vmem:[#allocation7 + $0x30] sm:$0xff]  ;;  %v319_v4 = vld [vmem:[#allocation5 + $0x28] sm:$0xff]  ;;  %s237_s12 = sshll.u32 %s445_s11, 4  ;;  %s238_s12 = int_to_ptr.vmem [resolvable:$true] %s237_s12 }
  0x10   :  { %218 = vmatpush.bf16.msra.mxu1 %v329_v2  ;;  %v327_v5 = vld [vmem:[#allocation7 + $0x28] sm:$0xff]  ;;  %v318_v6 = vld [vmem:[#allocation5 + $0x20] sm:$0xff]  ;;  %v317_v8 = vld [vmem:[#allocation5 + $0x18] sm:$0xff] }
  0x11   :  { %v326_v7 = vld [vmem:[#allocation7 + $0x20] sm:$0xff]  ;;  %v325_v9 = vld [vmem:[#allocation7 + $0x18] sm:$0xff]  ;;  %v316_v10 = vld [vmem:[#allocation5 + $0x10] sm:$0xff] }
  0x12   :  { %v324_v11 = vld [vmem:[#allocation7 + $0x10] sm:$0xff]  ;;  %v315_v12 = vld [vmem:[#allocation5 + $0x8] sm:$0xff]  ;;  %v314_v14 = vld [vmem:[#allocation5] sm:$0xff] }
  0x13   :  { %137 = vmatpush.bf16.msra.mxu0 %v320_v1  ;;  %v323_v13 = vld [vmem:[#allocation7 + $0x8] sm:$0xff]  ;;  %v66_v15 = vld [vmem:[#allocation2] sm:$0xff]  ;;  %v322_v17 = vld [vmem:[#allocation7] sm:$0xff] }
  0x14   :  { %219 = vmatpush.bf16.msra.mxu1 %v328_v3  ;;  %v84_v16 = vpack.c.bf16 %v66_v15, %v66_v15  ;;  %v336_v18 = vld [vmem:[%s496_s2] ss:$0 sm:$0xff] }
  0x15   :  { %v337_v23 = vld [vmem:[%s498_s4] ss:$0 sm:$0xff] }
  0x17   :  { %138 = vmatpush.bf16.msra.mxu0 %v319_v4 }
  0x18   :  { %220 = vmatpush.bf16.msra.mxu1 %v327_v5 }
  0x1b   :  { %139 = vmatpush.bf16.msra.mxu0 %v318_v6 }
  0x1c   :  { %221 = vmatpush.bf16.msra.mxu1 %v326_v7 }
  0x1f   :  { %140 = vmatpush.bf16.msra.mxu0 %v317_v8 }
  0x20   :  { %222 = vmatpush.bf16.msra.mxu1 %v325_v9 }
  0x23   :  { %141 = vmatpush.bf16.msra.mxu0 %v316_v10 }
  0x24   :  { %223 = vmatpush.bf16.msra.mxu1 %v324_v11 }
  0x27   :  { %142 = vmatpush.bf16.msra.mxu0 %v315_v12 }
  0x28   :  { %224 = vmatpush.bf16.msra.mxu1 %v323_v13 }
  0x2b   :  { %143 = vmatpush.bf16.msra.mxu0 %v314_v14 }
  0x2c   :  { %225 = vmatpush.bf16.msra.mxu1 %v322_v17 }
  0x2e   :  { %144 = vmatmul.bf16.vlgmr.msra.gmra.mxu0 %v84_v16 }
  0xab   :  { %v145_v19 = vpop.f32.mrf.mxu0 }
  0xac   :  { %v146_v20 = vadd.f32 %v336_v18, %v145_v19 }
  0xae   :  { %v166_v21 = vpack.c.bf16 %v146_v20, %v146_v20 }
  0xb0   :  { %226 = vmatmul.bf16.vlgmr.msra.gmra.mxu1 %v166_v21 }
  0xb3   :  { %v147_v22 = vpop.f32.mrf.mxu0 }
 0x12d   :  { %v227_v24 = vpop.f32.mrf.mxu1 }
 0x12e   :  { %v228_v25 = vadd.f32 %v337_v23, %v227_v24 }
 0x130   :  { %231 = vst [vmem:[#allocation8] sm:$0xff] %v228_v25 }
 0x131   :  { %242 = dma.vmem_to_hbm [thread:$0]  %s238_s12, 128, %s240_s15, [#allocation4]  }
 0x135   :  { %v229_v26 = vpop.f32.mrf.mxu1 }
 0x136   :  { %438 = dma.done.wait [#allocation4], 128  }
 0x137   :  { %439 = vsyncadd [#allocation4], 4294967168 }
 0x138   :  { %247 = vsyncpa [#allocation3], 1 }
 0x139   :  { %248 = vsyncpa [#allocation6], 1 }
 0x13a   :  { %249 = vsyncpa [#allocation4], 1 }

</bundles_post_ra>
